<compile_context>
chip_gen: v5e
topology: v5e:2x2
jax: 0.10.0
libtpu: 0.0.40
codegen_flags: <defaults>
</compile_context>

<pallas_src>
import functools

import jax
import jax.numpy as jnp
from jax import lax
from jax.experimental import pallas as pl
from jax.experimental.pallas import tpu as pltpu

_MIB = 1024 * 1024


def _label_smoothing_kernel(resp_ref, t_ref, out_ref, *, smoothing, confidence,
                            n_classes, col_chunk, dense_target):
    """One (row_tile, C) logits block -> (row_tile, 1) f32 smoothed NLL.

    t_ref is either the dense (row_tile, C) target block (dense_target=True)
    or a (row_tile, 1) int32 label column (dense_target=False).
    """
    R = resp_ref.shape[0]
    C = n_classes
    chunks = [(c0, min(col_chunk, C - c0)) for c0 in range(0, C, col_chunk)]

    # ---- pass 1: per-row maxima (chunked; no (R, C) f32 temporaries) ----
    m = jnp.full((R, 1), -jnp.inf, jnp.float32)
    tm = jnp.full((R, 1), -jnp.inf, jnp.float32) if dense_target else None
    for c0, ck in chunks:
        xc = resp_ref[:, c0:c0 + ck].astype(jnp.float32)
        m = jnp.maximum(m, jnp.max(xc, axis=-1, keepdims=True))
        if dense_target:
            tc = t_ref[:, c0:c0 + ck].astype(jnp.float32)
            tm = jnp.maximum(tm, jnp.max(tc, axis=-1, keepdims=True))

    # ---- pass 2 (fused): exp-sum, logit-sum and label-logit gather ----
    s = jnp.zeros((R, 1), jnp.float32)
    xsum = jnp.zeros((R, 1), jnp.float32)
    if dense_target:
        best_col = jnp.full((R, 1), float(C), jnp.float32)
        best_x = jnp.zeros((R, 1), jnp.float32)
    else:
        lbl = t_ref[...].astype(jnp.float32)          # (R, 1) integer labels as f32
        x_at = jnp.zeros((R, 1), jnp.float32)

    for c0, ck in chunks:
        xc = resp_ref[:, c0:c0 + ck].astype(jnp.float32)
        col = (lax.broadcasted_iota(jnp.int32, (R, ck), 1) + c0).astype(jnp.float32)
        s = s + jnp.sum(jnp.exp(xc - m), axis=-1, keepdims=True)
        xsum = xsum + jnp.sum(xc, axis=-1, keepdims=True)
        if dense_target:
            tc = t_ref[:, c0:c0 + ck].astype(jnp.float32)
            # lowest-index argmax of the dense target (matches jnp/torch argmax)
            cand_col = jnp.min(jnp.where(tc == tm, col, float(C)),
                               axis=-1, keepdims=True)
            cand_x = jnp.sum(jnp.where(col == cand_col, xc, 0.0),
                             axis=-1, keepdims=True)
            take = cand_col < best_col
            best_x = jnp.where(take, cand_x, best_x)
            best_col = jnp.where(take, cand_col, best_col)
        else:
            x_at = x_at + jnp.sum(jnp.where(col == lbl, xc, 0.0),
                                  axis=-1, keepdims=True)

    if dense_target:
        x_at = best_x

    lse = m + jnp.log(s)                              # per-row logsumexp
    nll = lse - x_at                                  # -logprobs[label]
    smooth = lse - xsum * (1.0 / C)                   # -mean(logprobs)
    out_ref[...] = (confidence * nll + smoothing * smooth).astype(out_ref.dtype)


def _vmem_budget_and_limit():
    """Chip-aware VMEM envelope (64 MiB/TC on v7x vs 128 MiB on v5e/v6e)."""
    try:
        cap = int(pltpu.get_tpu_info().vmem_capacity_bytes)
    except Exception:
        cap = 64 * _MIB                      # conservative (v7x-sized) fallback
    limit = min((cap * 3) // 4, 64 * _MIB)   # 48 MiB on v7x, 64 MiB on 128 MiB parts
    budget = max(limit - 12 * _MIB, 8 * _MIB)
    return budget, limit


def _choose_row_tile(n_rows, bytes_per_row, vmem_budget_bytes):
    """Largest multiple-of-8 row tile fitting the budget, with >= 2 grid steps."""
    if n_rows <= 8:
        return n_rows
    rt = int(vmem_budget_bytes // max(1, bytes_per_row))
    rt = max(8, (rt // 8) * 8)
    # keep at least 2 grid steps so dimension_semantics=("parallel",) can feed
    # both v7x TensorCores (also balances the ragged tail better).
    half = (((n_rows + 1) // 2) + 7) // 8 * 8
    return min(rt, max(8, half))


def label_smoothing_loss(responses, target=None, smoothing=0.0, *, labels=None,
                         row_tile=None, col_chunk=512,
                         vmem_budget_bytes=None, vmem_limit_bytes=None):
    """Pallas implementation of LabelSmoothing.forward (loss returned in float32).

    If `labels` (integer class ids, shape == responses.shape[:-1]) is given,
    the dense `target` is never read -> end-to-end HBM traffic is halved.
    Otherwise `target` is streamed through the kernel and its argmax is fused
    into the same pass (no separate XLA argmax / (N, 1) intermediate).
    """
    confidence = 1.0 - float(smoothing)
    response_shape = responses.shape
    C = int(response_shape[-1])
    resp2d = responses.reshape(-1, C)
    N = resp2d.shape[0]

    dense_target = labels is None
    if dense_target:
        if target is None:
            raise ValueError("provide either `target` or `labels`")
        t_in = target.reshape(-1, C)
    else:
        t_in = labels.reshape(-1, 1).astype(jnp.int32)

    resp_item = jnp.dtype(resp2d.dtype).itemsize
    t_item = jnp.dtype(t_in.dtype).itemsize
    ck = max(1, min(int(col_chunk), C))

    if vmem_budget_bytes is None or vmem_limit_bytes is None:
        auto_budget, auto_limit = _vmem_budget_and_limit()
        if vmem_budget_bytes is None:
            vmem_budget_bytes = auto_budget
        if vmem_limit_bytes is None:
            vmem_limit_bytes = auto_limit

    # Resident footprint per row: double-buffered input rows + chunk-local f32
    # temporaries (logits/target/iota/select results) + accumulator slivers.
    if dense_target:
        in_bytes_per_row = 2 * C * (resp_item + t_item)
    else:
        in_bytes_per_row = 2 * C * resp_item + 2 * t_item
    bytes_per_row = in_bytes_per_row + 6 * ck * 4 + 64

    if row_tile is None:
        row_tile = _choose_row_tile(N, bytes_per_row, vmem_budget_bytes)
    row_tile = int(row_tile)
    grid = (pl.cdiv(N, row_tile),)
    # TODO(synk): C-tiled online-logsumexp grid axis for >=128k-class vocabs.

    kernel = functools.partial(
        _label_smoothing_kernel,
        smoothing=float(smoothing), confidence=float(confidence),
        n_classes=C, col_chunk=ck, dense_target=dense_target)

    if dense_target:
        t_spec = pl.BlockSpec((row_tile, C), lambda i: (i, 0))
        in_bytes = N * C * (resp_item + t_item)
    else:
        t_spec = pl.BlockSpec((row_tile, 1), lambda i: (i, 0))
        in_bytes = N * C * resp_item + N * t_item

    cost = pl.CostEstimate(
        flops=int(8 * N * C),
        transcendentals=int(N * C + 2 * N),
        bytes_accessed=int(in_bytes + N * 4),
    )

    out = pl.pallas_call(
        kernel,
        out_shape=jax.ShapeDtypeStruct((N, 1), jnp.float32),
        grid_spec=pltpu.PrefetchScalarGridSpec(
            num_scalar_prefetch=0,
            grid=grid,
            in_specs=[
                pl.BlockSpec((row_tile, C), lambda i: (i, 0)),
                t_spec,
            ],
            out_specs=pl.BlockSpec((row_tile, 1), lambda i: (i, 0)),
        ),
        compiler_params=pltpu.CompilerParams(
            dimension_semantics=("parallel",),
            vmem_limit_bytes=int(vmem_limit_bytes),
        ),
        cost_estimate=cost,
    )(resp2d, t_in)

    return out[:, 0].reshape(response_shape[:-1])


def _reference(responses, target, smoothing):
    """Pure-JAX reference mirroring the PyTorch forward (computed in f32)."""
    confidence = 1.0 - smoothing
    C = responses.shape[-1]
    r = responses.reshape(-1, C).astype(jnp.float32)
    t = jnp.argmax(target.reshape(-1, C), axis=-1)
    logprobs = jax.nn.log_softmax(r, axis=-1)
    nll = -jnp.take_along_axis(logprobs, t[:, None], axis=-1)[:, 0]
    smooth = -jnp.mean(logprobs, axis=-1)
    return (confidence * nll + smoothing * smooth).reshape(responses.shape[:-1])


if __name__ == "__main__":
    key = jax.random.PRNGKey(0)
    k1, k2, k3, k4 = jax.random.split(key, 4)
    smoothing = 0.1

    # Case 1: typical (batch, seq, n_classes); dense target streamed through
    # the kernel with the argmax fused in (auto row tile, >=2 grid steps).
    batch, seq, n_classes = 2, 8, 32
    responses = jax.random.normal(k1, (batch, seq, n_classes), dtype=jnp.float32)
    labels = jax.random.randint(k2, (batch, seq), 0, n_classes)
    target = jax.nn.one_hot(labels, n_classes, dtype=jnp.float32)

    loss = jax.block_until_ready(label_smoothing_loss(responses, target, smoothing))
    ref = _reference(responses, target, smoothing)
    assert loss.shape == (batch, seq)
    assert jnp.allclose(loss, ref, atol=1e-5, rtol=1e-5), "mismatch (dense target)"

    # Case 1b: integer-label fast path (dense target never read).
    loss_lbl = jax.block_until_ready(
        label_smoothing_loss(responses, None, smoothing, labels=labels))
    assert jnp.allclose(loss_lbl, ref, atol=1e-5, rtol=1e-5), "mismatch (int labels)"

    # Case 2: row count not divisible by the tile -> ragged last block
    # (no padding copies; garbage tail rows are masked/discarded).
    b2, s2, c2 = 3, 5, 48
    responses2 = jax.random.normal(k3, (b2, s2, c2), dtype=jnp.float32)
    labels2 = jax.random.randint(k4, (b2, s2), 0, c2)
    target2 = jax.nn.one_hot(labels2, c2, dtype=jnp.float32)

    loss2 = jax.block_until_ready(
        label_smoothing_loss(responses2, target2, smoothing, row_tile=8))
    ref2 = _reference(responses2, target2, smoothing)
    assert loss2.shape == (b2, s2)
    assert jnp.allclose(loss2, ref2, atol=1e-5, rtol=1e-5), "mismatch (ragged block)"

    print("KERNEL_OK")
</pallas_src>

<mosaic_0001>
module attributes {stable_mosaic.version = 11 : i64} {
  func.func @_label_smoothing_kernel(%arg0: i32, %arg1: memref<8x32xf32, #tpu.memory_space<vmem>>, %arg2: memref<8x32xf32, #tpu.memory_space<vmem>>, %arg3: memref<8x1xf32, #tpu.memory_space<vmem>>) attributes {dimension_semantics = [#tpu.dimension_semantics<parallel>], iteration_bounds = array<i64: 2>, scalar_prefetch = 0 : i64, scratch_operands = 0 : i64, tpu.core_type = #tpu.core_type<tc>, window_params = [{transform_indices = @transform_0, window_bounds = array<i64: 8, 32>}, {transform_indices = @transform_1, window_bounds = array<i64: 8, 32>}, {transform_indices = @transform_2, window_bounds = array<i64: 8, 1>}]} {
    %cst = arith.constant 0xFF800000 : f32
    %0 = vector.broadcast %cst : f32 to vector<8x1xf32>
    %cst_0 = arith.constant 0xFF800000 : f32
    %1 = vector.broadcast %cst_0 : f32 to vector<8x1xf32>
    %c0 = arith.constant 0 : index
    %c0_1 = arith.constant 0 : index
    %2 = vector.load %arg1[%c0, %c0_1] : memref<8x32xf32, #tpu.memory_space<vmem>>, vector<8x32xf32>
    %cst_2 = arith.constant dense<0xFF800000> : vector<8xf32>
    %3 = vector.multi_reduction <maximumf>, %2, %cst_2 [1] : vector<8x32xf32> to vector<8xf32>
    %4 = vector.shape_cast %3 : vector<8xf32> to vector<8x1xf32>
    %5 = arith.maximumf %0, %4 : vector<8x1xf32>
    %c0_3 = arith.constant 0 : index
    %c0_4 = arith.constant 0 : index
    %6 = vector.load %arg2[%c0_3, %c0_4] : memref<8x32xf32, #tpu.memory_space<vmem>>, vector<8x32xf32>
    %cst_5 = arith.constant dense<0xFF800000> : vector<8xf32>
    %7 = vector.multi_reduction <maximumf>, %6, %cst_5 [1] : vector<8x32xf32> to vector<8xf32>
    %8 = vector.shape_cast %7 : vector<8xf32> to vector<8x1xf32>
    %9 = arith.maximumf %1, %8 : vector<8x1xf32>
    %cst_6 = arith.constant 0.000000e+00 : f32
    %10 = vector.broadcast %cst_6 : f32 to vector<8x1xf32>
    %cst_7 = arith.constant 0.000000e+00 : f32
    %11 = vector.broadcast %cst_7 : f32 to vector<8x1xf32>
    %cst_8 = arith.constant 3.200000e+01 : f32
    %12 = vector.broadcast %cst_8 : f32 to vector<8x1xf32>
    %cst_9 = arith.constant 0.000000e+00 : f32
    %13 = vector.broadcast %cst_9 : f32 to vector<8x1xf32>
    %c0_10 = arith.constant 0 : index
    %c0_11 = arith.constant 0 : index
    %14 = vector.load %arg1[%c0_10, %c0_11] : memref<8x32xf32, #tpu.memory_space<vmem>>, vector<8x32xf32>
    %15 = tpu.iota {dimensions = array<i32: 1>} : vector<8x32xi32>
    %c0_i32 = arith.constant 0 : i32
    %16 = vector.broadcast %c0_i32 : i32 to vector<8x32xi32>
    %17 = arith.addi %15, %16 : vector<8x32xi32>
    %18 = arith.sitofp %17 : vector<8x32xi32> to vector<8x32xf32>
    %19 = vector.broadcast %5 : vector<8x1xf32> to vector<8x32xf32>
    %20 = arith.subf %14, %19 : vector<8x32xf32>
    %21 = math.exp %20 : vector<8x32xf32>
    %cst_12 = arith.constant dense<0.000000e+00> : vector<8xf32>
    %22 = vector.multi_reduction <add>, %21, %cst_12 [1] : vector<8x32xf32> to vector<8xf32>
    %23 = vector.shape_cast %22 : vector<8xf32> to vector<8x1xf32>
    %24 = arith.addf %10, %23 : vector<8x1xf32>
    %cst_13 = arith.constant dense<0.000000e+00> : vector<8xf32>
    %25 = vector.multi_reduction <add>, %14, %cst_13 [1] : vector<8x32xf32> to vector<8xf32>
    %26 = vector.shape_cast %25 : vector<8xf32> to vector<8x1xf32>
    %27 = arith.addf %11, %26 : vector<8x1xf32>
    %c0_14 = arith.constant 0 : index
    %c0_15 = arith.constant 0 : index
    %28 = vector.load %arg2[%c0_14, %c0_15] : memref<8x32xf32, #tpu.memory_space<vmem>>, vector<8x32xf32>
    %29 = vector.broadcast %9 : vector<8x1xf32> to vector<8x32xf32>
    %30 = arith.cmpf oeq, %28, %29 : vector<8x32xf32>
    %cst_16 = arith.constant 3.200000e+01 : f32
    %31 = vector.broadcast %cst_16 : f32 to vector<8x32xf32>
    %32 = arith.select %30, %18, %31 : vector<8x32xi1>, vector<8x32xf32>
    %cst_17 = arith.constant dense<0x7F800000> : vector<8xf32>
    %33 = vector.multi_reduction <minimumf>, %32, %cst_17 [1] : vector<8x32xf32> to vector<8xf32>
    %34 = vector.shape_cast %33 : vector<8xf32> to vector<8x1xf32>
    %35 = vector.broadcast %34 : vector<8x1xf32> to vector<8x32xf32>
    %36 = arith.cmpf oeq, %18, %35 : vector<8x32xf32>
    %cst_18 = arith.constant 0.000000e+00 : f32
    %37 = vector.broadcast %cst_18 : f32 to vector<8x32xf32>
    %38 = arith.select %36, %14, %37 : vector<8x32xi1>, vector<8x32xf32>
    %cst_19 = arith.constant dense<0.000000e+00> : vector<8xf32>
    %39 = vector.multi_reduction <add>, %38, %cst_19 [1] : vector<8x32xf32> to vector<8xf32>
    %40 = vector.shape_cast %39 : vector<8xf32> to vector<8x1xf32>
    %41 = arith.cmpf olt, %34, %12 : vector<8x1xf32>
    %42 = arith.select %41, %40, %13 : vector<8x1xi1>, vector<8x1xf32>
    %43 = math.log %24 : vector<8x1xf32>
    %44 = arith.addf %5, %43 : vector<8x1xf32>
    %45 = arith.subf %44, %42 : vector<8x1xf32>
    %cst_20 = arith.constant 3.125000e-02 : f32
    %46 = vector.broadcast %cst_20 : f32 to vector<8x1xf32>
    %47 = arith.mulf %27, %46 : vector<8x1xf32>
    %48 = arith.subf %44, %47 : vector<8x1xf32>
    %cst_21 = arith.constant 0.899999976 : f32
    %49 = vector.broadcast %cst_21 : f32 to vector<8x1xf32>
    %50 = arith.mulf %49, %45 : vector<8x1xf32>
    %cst_22 = arith.constant 1.000000e-01 : f32
    %51 = vector.broadcast %cst_22 : f32 to vector<8x1xf32>
    %52 = arith.mulf %51, %48 : vector<8x1xf32>
    %53 = arith.addf %50, %52 : vector<8x1xf32>
    %c0_23 = arith.constant 0 : index
    %c0_24 = arith.constant 0 : index
    %54 = vector.load %arg3[%c0_23, %c0_24] : memref<8x1xf32, #tpu.memory_space<vmem>>, vector<8x1xf32>
    tpu.vector_store %arg3[%c0_23, %c0_24], %53 {strides = array<i32>} : memref<8x1xf32, #tpu.memory_space<vmem>>, vector<8x1xf32>,
    return
  }
  func.func @transform_0(%arg0: i32) -> (i32, i32) {
    %c0_i32 = arith.constant 0 : i32
    %c0_i32_0 = arith.constant 0 : i32
    return %arg0, %c0_i32 : i32, i32
  }
  func.func @transform_1(%arg0: i32) -> (i32, i32) {
    %c0_i32 = arith.constant 0 : i32
    %c0_i32_0 = arith.constant 0 : i32
    return %arg0, %c0_i32 : i32, i32
  }
  func.func @transform_2(%arg0: i32) -> (i32, i32) {
    %c0_i32 = arith.constant 0 : i32
    %c0_i32_0 = arith.constant 0 : i32
    return %arg0, %c0_i32 : i32, i32
  }
}

</mosaic_0001>

<bundles_post_ra>
// kernel: tpu_custom_call.1
= control target key start
LH: loop header
LB: loop body
LE: loop exit
PB: predicated region body
PF: predicated region fallthrough
CT: control target
= control target key end

     0   :  { %7 = vsyncpa [#allocation3], 0  ;;  %s642_s0 = inlined_call_operand.hbm [shape: f32[16,32], index: 0, kind: input, shape index: {}]   ;;  %s643_s1 = inlined_call_operand.hbm [shape: f32[16,32], index: 1, kind: input, shape index: {}]   ;;  %s644_s2 = inlined_call_operand.vmem [shape: f32[16,1], index: 2, kind: output, shape index: {}]  }
   0x1   :  { %9 = vsyncpa [#allocation3 + $0x1], 0 }
   0x2   :  { %10 = vsyncpa [#allocation5], 0 }
   0x3   :  { %12 = vsyncpa [#allocation5 + $0x1], 0  ;;  %s510_s9 = smov 0   ;;  %s512_s10 = smov 0  }
   0x4   :  { %s514_s11 = smov 0   ;;  %s516_s12 = smov 0  }
   0x5 LB: > { %s529_s13 = sadd.s32 4294967295, %s493_s12   ;;  %s532_s14 = sadd.s32 1, %s493_s12   ;;  %s493_s12 = sphi %s516_s12, %s652_s12   ;;  %s489_s11 = sphi %s514_s11, %s651_s11   ;;  %s485_s10 = sphi %s512_s10, %s650_s10   ;;  %s481_s9 = sphi %s510_s9, %s649_s9  }
   0x6   : > { %s22_s15 = ssub.s32 %s493_s12, %s532_s14  ;;  %s25_s16 = sadd.s32 1, %s489_s11 }
   0x7   : > { %p23_p0 = scmp.eq.s32.totalorder %s22_s15, 0  ;;  %p32_p1 = scmp.ne.s32.totalorder %s489_s11, %s485_s10 }
   0x8   : > { %p33_p2 = scmp.eq.s32.totalorder %s493_s12, 0  ;;  %p38_p3 = scmp.ne.s32.totalorder %s485_s10, %s481_s9 }
   0x9   : > { %s542_s17 = scalar_select %p23_p0, %s489_s11, %s25_s16  }
   0xa   : > { %p544_p4 = por %p33_p2, %p32_p1  ;;  %p39_p5 = scmp.eq.s32.totalorder %s529_s13, 0 }
   0xb   : > { %p358_p6 = scmp.lt.s32.totalorder %s493_s12, 2  ;;  %s555_s20 = sand.u32 1, %s489_s11  }
   0xc   : > { %p550_p7 = por %p39_p5, %p38_p3  ;;  %s337_s21 = sshll.u32 %s555_s20, 3 }
   0xd   : > { %s338_s22 = sshll.u32 %s493_s12, 3  ;;  %s118_s26 = scalar_lea.vmem [#allocation2], %s337_s21 }
   0xe   : > { %s122_s25 = scalar_lea.hbm %s642_s0, %s338_s22  ;;  %s126_s27 = sshll.u32 %s118_s26, 4  ;;  %s127_s27 = int_to_ptr.vmem [resolvable:$true] %s126_s27 }
   0xf   : > { %s124_s28 = sshll.u32 %s122_s25, 4  ;;  %p564_p8 = pnand %p358_p6, %p544_p4  ;;  %s125_s28 = int_to_ptr.hbm [resolvable:$true] %s124_s28 }
  0x10   : > { %p341_p9 = scmp.ge.s32.totalorder %s493_s12, 1  ;;  %p150_p10 = scmp.lt.s32.totalorder %s493_s12, 3 }
  0x11   : > { %s115_s30 = scalar_lea.sflag [#allocation3], %s555_s20  ;;  %s395_s3 = sshra.s32 %s125_s28, 4  ;;  %s396_s3 = int_to_ptr.hbm [resolvable:$true] %s395_s3 }
  0x12   : > { %s397_s4 = scalar_lea.hbm %s396_s3, 8  ;;  %p399_p12 = pneg %p564_p8 }
  0x13   : > { %p398_p11 = scmp.ne.s32.totalorder %s396_s3, %s397_s4  ;;  %s402_s7 = scalar_lea.hbm %s642_s0, 16 }
  0x14   : > { %p403_p1 = scmp.lt.s32.totalorder %s396_s3, %s642_s0  ;;  %p404_p2 = scmp.lt.s32.totalorder %s402_s7, %s397_s4 }
  0x15   : > { %p400_p13 = pnand %p399_p12, %p398_p11 }
  0x16   : > { %p405_p3 = por %p404_p2, %p403_p1 }
  0x17   : > { %p401_p0 = pneg %p400_p13 }
  0x19   : > { %p406_p4 = pnand %p405_p3, %p401_p0 }
  0x1b   : > { %409 = shalt.err (!%p406_p4)
}
  0x1c   : > { %354 = dma.hbm_to_vmem [thread:$0]  (!%p564_p8), %s125_s28, 128, %s127_s27, %s115_s30  }
  0x1d   : > { %p588_p5 = pnand %p341_p9, %p150_p10  ;;  %s141_s23 = scalar_lea.hbm %s643_s1, %s338_s22 }
  0x1e   : > { %s137_s24 = scalar_lea.vmem [#allocation4], %s337_s21  ;;  %s143_s26 = sshll.u32 %s141_s23, 4  ;;  %s144_s26 = int_to_ptr.hbm [resolvable:$true] %s143_s26 }
  0x1f   : > { %s145_s25 = sshll.u32 %s137_s24, 4  ;;  %s134_s3 = scalar_lea.sflag [#allocation5], %s555_s20  ;;  %s146_s25 = int_to_ptr.vmem [resolvable:$true] %s145_s25 }
  0x20   : > { %s425_s4 = sshra.s32 %s144_s26, 4  ;;  %s432_s28 = scalar_lea.hbm %s643_s1, 16  ;;  %s426_s4 = int_to_ptr.hbm [resolvable:$true] %s425_s4 }
  0x21   : > { %s427_s5 = scalar_lea.hbm %s426_s4, 8  ;;  %p433_p11 = scmp.lt.s32.totalorder %s426_s4, %s643_s1 }
  0x22   : > { %p428_p6 = scmp.ne.s32.totalorder %s426_s4, %s427_s5  ;;  %p434_p13 = scmp.lt.s32.totalorder %s432_s28, %s427_s5 }
  0x24   : > { %p430_p9 = pnand %p428_p6, %p399_p12  ;;  %p435_p0 = por %p434_p13, %p433_p11 }
  0x26   : > { %p431_p10 = pneg %p430_p9 }
  0x28   : > { %p436_p1 = pnand %p435_p0, %p431_p10 }
  0x2a   : > { %439 = shalt.err (!%p436_p1)
}
  0x2b   : > { %357 = dma.hbm_to_vmem [thread:$0]  (!%p564_p8), %s144_s26, 128, %s146_s25, %s134_s3  }
  0x2c   : > { %154 = sbr.rel (%p588_p5) target bundleno = 416 (0x1a0), region = 28  ;;  %s156_s20 = sand.u32 (!%p588_p5), 1, %s485_s10  }
  0x2d   : > { %s342_s21 = sshll.u32 (!%p588_p5), %s156_s20, 3  ;;  %s157_s6 = scalar_lea.sflag (!%p588_p5), [#allocation3], %s156_s20 }
  0x2e   : > { %s160_s7 = scalar_lea.vmem (!%p588_p5), [#allocation2], %s342_s21 }
  0x31   : > { %472 = dma.done.wait (%p550_p7), %s157_s6, 128  }
  0x32   : > { %474 = vsyncadd (%p550_p7), %s157_s6, 4294967168  ;;  %s167_s8 = scalar_lea.sflag [#allocation5], %s156_s20  ;;  %s170_s9 = scalar_lea.vmem [#allocation4], %s342_s21 }
  0x33   : > { %476 = dma.done.wait (%p550_p7), %s167_s8, 128  }
  0x34   : > { %478 = vsyncadd (%p550_p7), %s167_s8, 4294967168  ;;  %vm201_vm0 = vcmask 261120   ;;  %v205_v0 = vld [vmem:[%s170_s9] sm:$0xff]  ;;  %v200_v2 = vld [vmem:[%s160_s7] sm:$0xff]  ;;  %v209_v5 = vlaneseq  ;;  %p196_p7 = scmp.lt.s32.totalorder %s529_s13, 1  ;;  %vm244_vm4 = vcmask 7168  }
  0x35   : > { %v206_v1 = vsel %vm201_vm0, %v205_v0, -inf  ;;  %v202_v3 = vsel %vm201_vm0, %v200_v2, -inf  ;;  %v219_v4 = vsel %vm201_vm0, %v200_v2, 0.0 }
  0x36   : > { %207 = vmax.xlane.f32.xlu0 %v206_v1  ;;  %220 = vadd.xlane.f32.xlu2 %v219_v4  ;;  %v210_v6 = vand.u32 127, %v209_v5  ;;  %s654_s13 = smov (!%p196_p7, %s529_s13), 1 }
  0x37   : > { %s344_s19 = sshll.u32 %s654_s13, 3 }
  0x38   : > { %v211_v7 = vcvt.s32.f32 %v210_v6  ;;  %s199_s16 = scalar_lea.vmem %s644_s2, %s344_s19 }
  0x3e   : > { %203 = vmax.xlane.f32.xlu0 %v202_v3 }
  0xa9   : > { %v208_v8 = vpop.xlane.xlu0 %207  ;;  %v221_v22 = vpop.xlane.xlu2 %220 }
  0xaa   : > { %vm223_vm1 = vcmp.eq.f32.partialorder %v205_v0, %v208_v8  ;;  %v239_v24 = vmul.f32 0.03125, %v221_v22 }
  0xab   : > { %v224_v9 = vsel %vm223_vm1, %v211_v7, 32.0 }
  0xac   : > { %v225_v10 = vsel %vm201_vm0, %v224_v9, inf }
  0xad   : > { %226 = vmin.xlane.f32.xlu1 %v225_v10 }
  0xb1   : > { %v204_v11 = vpop.xlane.xlu0 %203 }
  0xb2   : > { %v212_v12 = vsub.f32 %v200_v2, %v204_v11 }
  0xb4   : > { %v213_v13 = vmul.f32 1.442695, %v212_v12 }
  0xb6   : > { %391 = vpow2.f32 %v213_v13 }
  0xbc   : > { %v392_v14 = vpop.eup %391 }
  0xbd   : > { %v215_v15 = vsel %vm201_vm0, %v392_v14, 0.0 }
  0xbe   : > { %216 = vadd.xlane.f32.xlu1 %v215_v15 }
 0x120   : > { %v227_v16 = vpop.xlane.xlu1 %226 }
 0x121   : > { %vm228_vm2 = vcmp.eq.f32.partialorder %v211_v7, %v227_v16  ;;  %vm233_vm3 = vcmp.lt.f32.partialorder %v227_v16, 32.0 }
 0x122   : > { %v229_v17 = vsel %vm228_vm2, %v200_v2, 0.0 }
 0x123   : > { %v230_v18 = vsel %vm201_vm0, %v229_v17, 0.0 }
 0x124   : > { %231 = vadd.xlane.f32.xlu2 %v230_v18 }
 0x131   : > { %v217_v19 = vpop.xlane.xlu1 %216 }
 0x132   : > { %393 = vlog2.f32 %v217_v19 }
 0x138   : > { %v394_v20 = vpop.eup %393 }
 0x139   : > { %v236_v21 = vmul.f32 0.6931472, %v394_v20 }
 0x13b   : > { %v237_v23 = vadd.f32 %v236_v21, %v204_v11 }
 0x13d   : > { %v240_v25 = vsub.f32 %v237_v23, %v239_v24 }
 0x13f   : > { %v242_v29 = vmul.f32 0.1, %v240_v25 }
 0x197   : > { %v232_v26 = vpop.xlane.xlu2 %231 }
 0x198   : > { %v234_v27 = vsel %vm233_vm3, %v232_v26, 0.0 }
 0x199   : > { %v238_v28 = vsub.f32 %v237_v23, %v234_v27 }
 0x19b   : > { %v241_v30 = vmul.f32 0.9, %v238_v28 }
 0x19d   : > { %v243_v31 = vadd.f32 %v242_v29, %v241_v30 }
 0x19f   : > { %245 = vst.msk [vmem:[%s199_s16] sm:$0xff] %vm244_vm4, %v243_v31 }
 0x1a0 PF: > { %p15_p8 = scmp.ge.s32.totalorder %s532_s14, 4   ;;  %s649_s9 = smov %s485_s10 }
 0x1a1   : > { %s650_s10 = smov %s489_s11  ;;  %s651_s11 = smov %s542_s17 }
 0x1a2   : > { %s652_s12 = smov %s532_s14  ;;  %17 = sbr.rel (!%p15_p8) target bundleno = 5 (0x5), region = 81 }
 0x1a7   :  { %265 = vsyncpa [#allocation3], 1 }
 0x1a8   :  { %267 = vsyncpa [#allocation3 + $0x1], 1 }
 0x1a9   :  { %268 = vsyncpa [#allocation5], 1 }
 0x1aa   :  { %270 = vsyncpa [#allocation5 + $0x1], 1 }

</bundles_post_ra>
